<compile_context>
chip_gen: v5e
topology: v5e:2x2
jax: 0.10.0
libtpu: 0.0.40
codegen_flags: <defaults>
</compile_context>

<pallas_src>
import functools

import jax
import jax.numpy as jnp
from jax.experimental import pallas as pl
from jax.experimental.pallas import tpu as pltpu


def _round_up(x, m):
    return ((x + m - 1) // m) * m


def _divisors(n):
    return [d for d in range(1, n + 1) if n % d == 0]


def _vmem_budget_bytes():
    """Generation-aware scoped-VMEM budget (~3/4 of physical, clamped)."""
    try:
        phys = int(pltpu.get_tpu_info().vmem_capacity_bytes)
        return max(32 << 20, min((phys * 3) // 4, 96 << 20))
    except Exception:
        return 48 << 20  # safe on every generation (v7x has 64 MiB physical VMEM)


def _pick_tiles(n, hp, itemsize, vmem_budget):
    """Pick (padded Np, row tile tm, reduction tile tk).

    Np is rounded up to 128 only (A traffic scales as Np^2, so minimal padding).
    tk is the lane width of the A1/A2 column slabs -> multiple of 128, divides Np.
    tm is a sublane dim -> multiple of 8, divides Np; prefer >=2 row blocks so
    the "parallel" grid axis can shard across TensorCores.
    The largest (tk, tm) whose double-buffered working set fits the VMEM budget
    is chosen (per-grid-step overhead ~0.35us favors big tiles).
    """
    np_ = _round_up(max(n, 1), 128)
    divs = _divisors(np_)
    tk_cands = sorted([d for d in divs if d % 128 == 0], reverse=True)
    tm_all = sorted([d for d in divs if d % 8 == 0 and d <= 512], reverse=True)
    tm_pref = [t for t in tm_all if t >= 64 and np_ // t >= 2]
    tm_cands = tm_pref or tm_all

    def fits(tm_, tk_):
        work = (2 * tm_ * 2 * tk_ * itemsize                     # A12 tile (dbl buf)
                + 2 * (2 * tk_ * hp + tm_ * hp) * itemsize       # XW12 slab + XW0 tile
                + 2 * tm_ * hp * itemsize                        # out tile
                + tm_ * hp * 4)                                  # f32 accumulator
        return work <= int(0.8 * vmem_budget)

    for tk in tk_cands:
        for tm in tm_cands:
            if fits(tm, tk):
                return np_, tm, tk
    return np_, min(tm_cands), min(tk_cands)


# ----------------------------------------------------------------------------
# Kernels
# ----------------------------------------------------------------------------
def _feature_transform_kernel(x_ref, w_ref, o0_ref, o12_ref):
    """XW = X @ [Wln | W1 | W2] for one tk-row slab; emits XW0 and [XW1;XW2]."""
    tk, hp = o0_ref.shape
    xw = jnp.dot(x_ref[...], w_ref[...], preferred_element_type=jnp.float32)
    o0_ref[...] = xw[:, :hp].astype(o0_ref.dtype)
    # Interleaved stacking matching the [A1|A2] column-slab layout.
    o12_ref[pl.ds(0, tk), :] = xw[:, hp:2 * hp].astype(o12_ref.dtype)
    o12_ref[pl.ds(tk, tk), :] = xw[:, 2 * hp:].astype(o12_ref.dtype)


def _msgpass_kernel(xw0_ref, a12_ref, xw12_ref, o_ref, acc_ref, *, xw_resident):
    """out[i] = XW0[i] + sum_k [A1|A2][i,k-slab] @ [XW1;XW2][k-slab]."""
    k = pl.program_id(1)
    two_tk = a12_ref.shape[1]

    @pl.when(k == 0)
    def _():
        # Identity / linear branch initializes the accumulator (no zero pass).
        acc_ref[...] = xw0_ref[...].astype(jnp.float32)

    if xw_resident:
        start = pl.multiple_of(k * two_tk, two_tk)
        xw = xw12_ref[pl.ds(start, two_tk), :]
    else:
        xw = xw12_ref[...]

    # Single fused MXU dot: A1@XW1 + A2@XW2 for this (row, reduction) tile.
    acc_ref[...] += jnp.dot(a12_ref[...], xw, preferred_element_type=jnp.float32)

    @pl.when(k == pl.num_programs(1) - 1)
    def _():
        o_ref[...] = acc_ref[...].astype(o_ref.dtype)   # lane-dense (tm, hp) store


# ----------------------------------------------------------------------------
# Per-layer wrapper
# ----------------------------------------------------------------------------
def _pack_weights(w_ln, w1, w2, fin_pad, hp, dtype):
    """[Wln | W1 | W2], in_dim padded to fin_pad, out_dim padded to hp (zeros)."""
    in_dim, h = w_ln.shape

    def pad(w):
        return jnp.pad(w, ((0, fin_pad - in_dim), (0, hp - h)))

    return jnp.concatenate([pad(w_ln), pad(w1), pad(w2)], axis=1).astype(dtype)


def _inception_block_padded(xp, a12, w_cat, *, tm, tk, hp, compute_dtype,
                            vmem_budget, xw_resident=None):
    """One fused InceptionBlock on row-padded inputs.

    xp:    (Np, Fin)   node features (padded rows are zero), compute dtype.
    a12:   (Np, 2*Np)  [A1|A2] with columns interleaved by tk slabs.
    w_cat: (Fin, 3*hp) [Wln|W1|W2], zero padded.
    Returns (Np, hp) in compute dtype (lane-dense, stays padded between layers).
    """
    np_, fin = xp.shape
    nk = np_ // tk
    nm = np_ // tm
    itemsize = jnp.dtype(compute_dtype).itemsize

    # -- pass 1: hoisted feature transform (once per layer, not per row block) --
    ft_grid = pltpu.PrefetchScalarGridSpec(
        num_scalar_prefetch=0,
        grid=(nk,),
        in_specs=[pl.BlockSpec((tk, fin), lambda k: (k, 0)),
                  pl.BlockSpec((fin, 3 * hp), lambda k: (0, 0))],   # resident
        out_specs=[pl.BlockSpec((tk, hp), lambda k: (k, 0)),
                   pl.BlockSpec((2 * tk, hp), lambda k: (k, 0))],
    )
    xw0, xw12 = pl.pallas_call(
        _feature_transform_kernel,
        out_shape=(jax.ShapeDtypeStruct((np_, hp), compute_dtype),
                   jax.ShapeDtypeStruct((2 * np_, hp), compute_dtype)),
        grid_spec=ft_grid,
        compiler_params=pltpu.CompilerParams(
            dimension_semantics=("parallel",),
            vmem_limit_bytes=vmem_budget),
        cost_estimate=pl.CostEstimate(
            flops=int(2 * np_ * fin * 3 * hp), transcendentals=0,
            bytes_accessed=int((np_ * fin + fin * 3 * hp + 3 * np_ * hp) * itemsize)),
    )(xp, w_cat)

    # -- residency decision for XW12 in the message-passing pass ---------------
    if xw_resident is None:
        need = (2 * (2 * np_ * hp) * itemsize        # resident XW12 (count 2 bufs)
                + 2 * tm * 2 * tk * itemsize         # A12 tile, double buffered
                + 4 * tm * hp * itemsize             # XW0 + out tiles, double buffered
                + tm * hp * 4)                       # f32 accumulator
        xw_resident = need <= int(0.8 * vmem_budget)

    if xw_resident:
        xw12_spec = pl.BlockSpec((2 * np_, hp), lambda i, k: (0, 0))
    else:
        xw12_spec = pl.BlockSpec((2 * tk, hp), lambda i, k: (k, 0))

    mp_grid = pltpu.PrefetchScalarGridSpec(
        num_scalar_prefetch=0,
        grid=(nm, nk),
        in_specs=[pl.BlockSpec((tm, hp), lambda i, k: (i, 0)),       # XW0 rows
                  pl.BlockSpec((tm, 2 * tk), lambda i, k: (i, k)),   # [A1|A2] tile
                  xw12_spec],
        out_specs=pl.BlockSpec((tm, hp), lambda i, k: (i, 0)),
        scratch_shapes=[pltpu.VMEM((tm, hp), jnp.float32)],
    )

    flops = int(2 * np_ * (2 * np_) * hp)
    bytes_accessed = int(
        np_ * 2 * np_ * itemsize
        + ((2 if xw_resident else 2 * nm) + 1 + 1) * np_ * hp * itemsize)

    out = pl.pallas_call(
        functools.partial(_msgpass_kernel, xw_resident=xw_resident),
        out_shape=jax.ShapeDtypeStruct((np_, hp), compute_dtype),
        grid_spec=mp_grid,
        compiler_params=pltpu.CompilerParams(
            dimension_semantics=("parallel", "arbitrary"),
            vmem_limit_bytes=vmem_budget),
        cost_estimate=pl.CostEstimate(
            flops=flops, transcendentals=0, bytes_accessed=bytes_accessed),
    )(xw0, a12, xw12)
    return out


# ----------------------------------------------------------------------------
# Model glue
# ----------------------------------------------------------------------------
def dense_adj(edge_index, edge_attr, num_nodes):
    """Densify (edge_index, edge_attr) into A with A[dst, src] = attr (dups summed)."""
    src, dst = edge_index[0], edge_index[1]
    a = jnp.zeros((num_nodes, num_nodes), jnp.float32)
    return a.at[dst, src].add(edge_attr)


def init_params(key, nfeat, nhid, nlayer):
    """Deterministic glorot-uniform-ish init; weights stored (in_dim, out_dim)."""
    params = []
    in_dim = nfeat
    for _ in range(nlayer):
        key, k_ln, k_w1, k_w2 = jax.random.split(key, 4)
        scale = (6.0 / (in_dim + nhid)) ** 0.5
        w_ln = jax.random.uniform(k_ln, (in_dim, nhid), jnp.float32, -scale, scale)
        w1 = jax.random.uniform(k_w1, (in_dim, nhid), jnp.float32, -scale, scale)
        w2 = jax.random.uniform(k_w2, (in_dim, nhid), jnp.float32, -scale, scale)
        params.append((w_ln, w1, w2))
        in_dim = nhid
    return params


def digcn_ib_sum_forward(x, edge_index, edge_attr, edge_index2, edge_attr2,
                         batch, num_graphs, params, *,
                         compute_dtype=jnp.bfloat16, xw_resident=None,
                         _force_tiles=None):
    """Forward pass of DiGCN_IB_Sum (eval mode -> dropout is identity)."""
    n, _ = x.shape
    h = params[0][0].shape[1]
    hp = _round_up(h, 128)
    itemsize = jnp.dtype(compute_dtype).itemsize
    vmem_budget = _vmem_budget_bytes()
    np_, tm, tk = _pick_tiles(n, hp, itemsize, vmem_budget)
    if _force_tiles is not None:                      # testing hook
        tm, tk = _force_tiles
    assert np_ % tm == 0 and np_ % tk == 0 and tk % 128 == 0 and tm % 8 == 0
    pad_n = np_ - n
    nk = np_ // tk

    # Densify + pad ONCE; interleave [A1 | A2] column slabs of width tk so the
    # message-passing kernel needs a single dot per reduction step.  Reused by
    # every layer (by far the largest operand).
    a1p = jnp.pad(dense_adj(edge_index, edge_attr, n), ((0, pad_n), (0, pad_n)))
    a2p = jnp.pad(dense_adj(edge_index2, edge_attr2, n), ((0, pad_n), (0, pad_n)))
    a12 = jnp.concatenate(
        [a1p.reshape(np_, nk, tk), a2p.reshape(np_, nk, tk)], axis=2
    ).reshape(np_, 2 * np_).astype(compute_dtype)

    # TODO(synk): when 2*Np^2*itemsize fits VMEM, all nlayer blocks could be
    # fused into one pallas_call with A12 resident across layers (saves nlayer x
    # re-streaming of A from HBM).  Kept per-layer here for generality.
    # TODO(synk): on v7x, fp8(e4m3)+scales for A12 would halve the dominant HBM
    # traffic again; not enabled by default (needs accuracy plumbing).

    xp = jnp.pad(x, ((0, pad_n), (0, 0))).astype(compute_dtype)
    for (w_ln, w1, w2) in params:
        w_cat = _pack_weights(w_ln, w1, w2, fin_pad=xp.shape[1], hp=hp,
                              dtype=compute_dtype)
        xp = _inception_block_padded(xp, a12, w_cat, tm=tm, tk=tk, hp=hp,
                                     compute_dtype=compute_dtype,
                                     vmem_budget=vmem_budget,
                                     xw_resident=xw_resident)
        # TODO(synk): dropout omitted (inference / training=False => identity).

    x_out = xp[:n, :h].astype(jnp.float32)
    # Per-graph split (host-side glue; mirrors the PyTorch `x[batch == g]`).
    return [x_out[batch == g] for g in range(num_graphs)]


def reference_forward(x, a1, a2, params):
    """Pure-JAX f32 reference for correctness checking."""
    for (w_ln, w1, w2) in params:
        x = x @ w_ln + a1 @ (x @ w1) + a2 @ (x @ w2)
    return x


# ----------------------------------------------------------------------------
if __name__ == "__main__":
    NFEAT, NHID, NLAYER, NUM_GRAPHS = 16, 32, 2, 2
    key = jax.random.PRNGKey(0)

    def make_graph(key, n, e):
        key, kx, ke1, ke2, ka1, ka2 = jax.random.split(key, 6)
        x = jax.random.normal(kx, (n, NFEAT), jnp.float32)
        ei = jax.random.randint(ke1, (2, e), 0, n, dtype=jnp.int32)
        ea = jax.random.uniform(ka1, (e,), jnp.float32, 0.0, 1.0) / 8.0
        ei2 = jax.random.randint(ke2, (2, e), 0, n, dtype=jnp.int32)
        ea2 = jax.random.uniform(ka2, (e,), jnp.float32, 0.0, 1.0) / 8.0
        batch = jnp.repeat(jnp.arange(NUM_GRAPHS, dtype=jnp.int32), n // NUM_GRAPHS)
        return key, (x, ei, ea, ei2, ea2, batch)

    key, kp = jax.random.split(key)
    params = init_params(kp, NFEAT, NHID, NLAYER)

    # --- graph 1: 2 graphs x 32 nodes = 64 nodes --------------------------------
    N1 = 64
    key, g1 = make_graph(key, N1, 256)
    x1, ei1, ea1, ei1b, ea1b, b1 = g1

    # 1) default performance path: bf16 MXU operands, f32 accumulation.
    emb_bf16 = digcn_ib_sum_forward(x1, ei1, ea1, ei1b, ea1b, b1, NUM_GRAPHS,
                                    params, compute_dtype=jnp.bfloat16)
    emb_bf16 = [jax.block_until_ready(e) for e in emb_bf16]

    # 2) f32 paths (resident and streamed XW12) for tight correctness checks.
    emb_f32_res = digcn_ib_sum_forward(x1, ei1, ea1, ei1b, ea1b, b1, NUM_GRAPHS,
                                       params, compute_dtype=jnp.float32)
    emb_f32_res = [jax.block_until_ready(e) for e in emb_f32_res]
    emb_f32_str = digcn_ib_sum_forward(x1, ei1, ea1, ei1b, ea1b, b1, NUM_GRAPHS,
                                       params, compute_dtype=jnp.float32,
                                       xw_resident=False)
    emb_f32_str = [jax.block_until_ready(e) for e in emb_f32_str]

    ref1 = reference_forward(x1, dense_adj(ei1, ea1, N1),
                             dense_adj(ei1b, ea1b, N1), params)

    got = jnp.concatenate(emb_f32_res, axis=0)
    assert got.shape == (N1, NHID)
    assert jnp.allclose(got, ref1, atol=1e-4, rtol=1e-4), "f32 (resident) mismatch"
    got = jnp.concatenate(emb_f32_str, axis=0)
    assert jnp.allclose(got, ref1, atol=1e-4, rtol=1e-4), "f32 (streamed) mismatch"
    got = jnp.concatenate(emb_bf16, axis=0)
    assert got.shape == (N1, NHID)
    assert jnp.allclose(got, ref1, atol=1e-1, rtol=1e-1), "bf16 kernel mismatch"

    # --- graph 2: exercises a multi-step reduction axis (nk > 1, nm > 1) --------
    N2 = 192
    key, g2 = make_graph(key, N2, 512)
    x2, ei2, ea2, ei2b, ea2b, b2 = g2
    ref2 = reference_forward(x2, dense_adj(ei2, ea2, N2),
                             dense_adj(ei2b, ea2b, N2), params)
    for resident in (True, False):
        emb2 = digcn_ib_sum_forward(x2, ei2, ea2, ei2b, ea2b, b2, NUM_GRAPHS,
                                    params, compute_dtype=jnp.float32,
                                    xw_resident=resident,
                                    _force_tiles=(128, 128))
        emb2 = [jax.block_until_ready(e) for e in emb2]
        got2 = jnp.concatenate(emb2, axis=0)
        assert got2.shape == (N2, NHID)
        assert jnp.allclose(got2, ref2, atol=1e-4, rtol=1e-4), \
            f"multi-k f32 mismatch (resident={resident})"

    print("KERNEL_OK")
</pallas_src>

<mosaic_0001>
module attributes {stable_mosaic.version = 11 : i64} {
  func.func @_feature_transform_kernel(%arg0: i32, %arg1: memref<128x16xbf16, #tpu.memory_space<vmem>>, %arg2: memref<16x384xbf16, #tpu.memory_space<vmem>>, %arg3: memref<128x128xbf16, #tpu.memory_space<vmem>>, %arg4: memref<256x128xbf16, #tpu.memory_space<vmem>>) attributes {dimension_semantics = [#tpu.dimension_semantics<parallel>], iteration_bounds = array<i64: 1>, scalar_prefetch = 0 : i64, scratch_operands = 0 : i64, tpu.core_type = #tpu.core_type<tc>, window_params = [{transform_indices = @transform_0, window_bounds = array<i64: 128, 16>}, {pipeline_mode = #tpu.pipeline_mode<synchronous>, transform_indices = @transform_1, window_bounds = array<i64: 16, 384>}, {transform_indices = @transform_2, window_bounds = array<i64: 128, 128>}, {transform_indices = @transform_3, window_bounds = array<i64: 256, 128>}]} {
    %c0 = arith.constant 0 : index
    %c0_0 = arith.constant 0 : index
    %0 = vector.load %arg1[%c0, %c0_0] : memref<128x16xbf16, #tpu.memory_space<vmem>>, vector<128x16xbf16>
    %c0_1 = arith.constant 0 : index
    %c0_2 = arith.constant 0 : index
    %1 = vector.load %arg2[%c0_1, %c0_2] : memref<16x384xbf16, #tpu.memory_space<vmem>>, vector<16x384xbf16>
    %cst = arith.constant dense<0.000000e+00> : vector<128x384xf32>
    %2 = tpu.matmul %0, %1, %cst {dimension_numbers = #tpu.dot_dimension_numbers<[1], [0], [0], [1], [0, 0, 1, 1], [], []>} : vector<128x16xbf16>, vector<16x384xbf16>, vector<128x384xf32> -> vector<128x384xf32>
    %3 = vector.extract_strided_slice %2 {offsets = [0, 0], sizes = [128, 128], strides = [1, 1]} : vector<128x384xf32> to vector<128x128xf32>
    %4 = arith.truncf %3 : vector<128x128xf32> to vector<128x128xbf16>
    %c0_3 = arith.constant 0 : index
    %c0_4 = arith.constant 0 : index
    %5 = vector.load %arg3[%c0_3, %c0_4] : memref<128x128xbf16, #tpu.memory_space<vmem>>, vector<128x128xbf16>
    tpu.vector_store %arg3[%c0_3, %c0_4], %4 {strides = array<i32>} : memref<128x128xbf16, #tpu.memory_space<vmem>>, vector<128x128xbf16>,
    %6 = vector.extract_strided_slice %2 {offsets = [0, 128], sizes = [128, 128], strides = [1, 1]} : vector<128x384xf32> to vector<128x128xf32>
    %7 = arith.truncf %6 : vector<128x128xf32> to vector<128x128xbf16>
    %c0_5 = arith.constant 0 : index
    %c0_6 = arith.constant 0 : index
    %8 = vector.load %arg4[%c0_5, %c0_6] : memref<256x128xbf16, #tpu.memory_space<vmem>>, vector<128x128xbf16>
    tpu.vector_store %arg4[%c0_5, %c0_6], %7 {strides = array<i32>} : memref<256x128xbf16, #tpu.memory_space<vmem>>, vector<128x128xbf16>,
    %9 = vector.extract_strided_slice %2 {offsets = [0, 256], sizes = [128, 128], strides = [1, 1]} : vector<128x384xf32> to vector<128x128xf32>
    %10 = arith.truncf %9 : vector<128x128xf32> to vector<128x128xbf16>
    %c128 = arith.constant 128 : index
    %c0_7 = arith.constant 0 : index
    %11 = vector.load %arg4[%c128, %c0_7] : memref<256x128xbf16, #tpu.memory_space<vmem>>, vector<128x128xbf16>
    tpu.vector_store %arg4[%c128, %c0_7], %10 {strides = array<i32>} : memref<256x128xbf16, #tpu.memory_space<vmem>>, vector<128x128xbf16>,
    return
  }
  func.func @transform_0(%arg0: i32) -> (i32, i32) {
    %c0_i32 = arith.constant 0 : i32
    %c0_i32_0 = arith.constant 0 : i32
    return %arg0, %c0_i32 : i32, i32
  }
  func.func @transform_1(%arg0: i32) -> (i32, i32) {
    %c0_i32 = arith.constant 0 : i32
    %c0_i32_0 = arith.constant 0 : i32
    %c0_i32_1 = arith.constant 0 : i32
    return %c0_i32, %c0_i32_0 : i32, i32
  }
  func.func @transform_2(%arg0: i32) -> (i32, i32) {
    %c0_i32 = arith.constant 0 : i32
    %c0_i32_0 = arith.constant 0 : i32
    return %arg0, %c0_i32 : i32, i32
  }
  func.func @transform_3(%arg0: i32) -> (i32, i32) {
    %c0_i32 = arith.constant 0 : i32
    %c0_i32_0 = arith.constant 0 : i32
    return %arg0, %c0_i32 : i32, i32
  }
}

</mosaic_0001>

<bundles_post_ra>
// kernel: tpu_custom_call.1
= control target key start
LH: loop header
LB: loop body
LE: loop exit
PB: predicated region body
PF: predicated region fallthrough
CT: control target
= control target key end

     0   :  { %9 = vsyncpa [#allocation3], 0  ;;  %vm92_vm0 = vcmask 130048   ;;  %s772_s0 = inlined_call_operand.vmem [shape: bf16[128,16], index: 0, kind: input, shape index: {}]   ;;  %s773_s1 = inlined_call_operand.vmem [shape: bf16[16,384], index: 1, kind: input, shape index: {}]   ;;  %s774_s2 = inlined_call_operand.hbm [shape: bf16[128,128], index: 2, kind: output, shape index: {0}]   ;;  %s775_s3 = inlined_call_operand.hbm [shape: bf16[256,128], index: 3, kind: output, shape index: {1}]  }
   0x1   :  { %v430_v0 = vld [vmem:[%s773_s1] sm:$0xf]  ;;  %v473_v1 = vld [vmem:[%s773_s1 + $0x8] sm:$0xf0]  ;;  %v472_v2 = vld [vmem:[%s773_s1 + $0x4] sm:$0xf] }
   0x2   :  { %v431_v3 = vor.u32 %v473_v1, %v430_v0  ;;  %v432_v4 = vld [vmem:[%s773_s1 + $0xc] sm:$0xf0]  ;;  %v438_v5 = vld [vmem:[%s773_s1 + $0x8] sm:$0xf]  ;;  %v474_v6 = vld [vmem:[%s773_s1 + $0x10] sm:$0xf0] }
   0x3   :  { %v435_v7 = vor.u32 %v472_v2, %v432_v4  ;;  %v439_v8 = vor.u32 %v474_v6, %v438_v5  ;;  %v464_v9 = vld [vmem:[%s772_s0] sm:$0xff]  ;;  %v470_v10 = vld [vmem:[%s772_s0 + $0x30] sm:$0xff] }
   0x4   :  { %124 = vmatpush.bf16.msra.mxu0 %v431_v3  ;;  %617 = vmatpush.bf16.msra.mxu3 %v431_v3 }
   0x5   :  { %10 = vsyncpa [#allocation5], 0  ;;  %173 = vmatpush.bf16.msra.mxu1 %v435_v7  ;;  %222 = vmatpush.bf16.msra.mxu2 %v439_v8  ;;  %v465_v11 = vld [vmem:[%s772_s0 + $0x8] sm:$0xff]  ;;  %v471_v12 = vld [vmem:[%s772_s0 + $0x38] sm:$0xff]  ;;  %s366_s15 = sshll.u32 %s774_s2, 4  ;;  %s677_s16 = smov 64   ;;  %s367_s15 = int_to_ptr.hbm [resolvable:$true] %s366_s15 }
   0x6   :  { %v466_v13 = vld [vmem:[%s772_s0 + $0x10] sm:$0xff]  ;;  %v467_v14 = vld [vmem:[%s772_s0 + $0x18] sm:$0xff]  ;;  %v468_v15 = vld [vmem:[%s772_s0 + $0x20] sm:$0xff]  ;;  %s678_s17 = smov 4   ;;  %s679_s18 = smov [#allocation4]  }
   0x7   :  { %440 = vmatmul.msk.bf16.vlgmr.msra.gmra.mxu0 %vm92_vm0, %v464_v9  ;;  %446 = vmatmul.msk.bf16.vlgmr.msra.gmra.mxu3 %vm92_vm0, %v470_v10  ;;  %v469_v16 = vld [vmem:[%s772_s0 + $0x28] sm:$0xff]  ;;  %s676_s0 = smov [#allocation2]   ;;  %s377_s19 = sshll.u32 %s679_s18, 4  ;;  %s378_s19 = int_to_ptr.vmem [resolvable:$true] %s377_s19 }
   0x8   :  { %618 = vmatpush.bf16.msrb.mxu3 %v435_v7  ;;  %448 = vmatmul.msk.bf16.vlgmr.msra.gmra.mxu1 %vm92_vm0, %v464_v9  ;;  %s364_s12 = sshll.u32 %s676_s0, 4  ;;  %s379_s22 = sshll.u32 %s775_s3, 4  ;;  %s365_s12 = int_to_ptr.vmem [resolvable:$true] %s364_s12  ;;  %s380_s22 = int_to_ptr.hbm [resolvable:$true] %s379_s22 }
   0x9   :  { %456 = vmatmul.msk.bf16.vlgmr.msra.gmra.mxu2 %vm92_vm0, %v464_v9 }
   0xc   :  { %619 = vmatpush.bf16.msra.mxu3 %v439_v8 }
  0x17   :  { %441 = vmatmul.msk.bf16.gmra.mxu0 %vm92_vm0, %v465_v11  ;;  %447 = vmatmul.msk.bf16.gmra.mxu3 %vm92_vm0, %v471_v12 }
  0x18   :  { %449 = vmatmul.msk.bf16.gmra.mxu1 %vm92_vm0, %v465_v11 }
  0x19   :  { %457 = vmatmul.msk.bf16.gmra.mxu2 %vm92_vm0, %v465_v11 }
  0x27   :  { %442 = vmatmul.msk.bf16.gmra.mxu0 %vm92_vm0, %v466_v13  ;;  %454 = vmatmul.msk.bf16.vlgmr.msrb.gmra.mxu3 %vm92_vm0, %v470_v10 }
  0x28   :  { %450 = vmatmul.msk.bf16.gmra.mxu1 %vm92_vm0, %v466_v13 }
  0x29   :  { %458 = vmatmul.msk.bf16.gmra.mxu2 %vm92_vm0, %v466_v13 }
  0x37   :  { %443 = vmatmul.msk.bf16.gmra.mxu0 %vm92_vm0, %v467_v14  ;;  %455 = vmatmul.msk.bf16.gmra.mxu3 %vm92_vm0, %v471_v12 }
  0x38   :  { %451 = vmatmul.msk.bf16.gmra.mxu1 %vm92_vm0, %v467_v14 }
  0x39   :  { %459 = vmatmul.msk.bf16.gmra.mxu2 %vm92_vm0, %v467_v14 }
  0x47   :  { %444 = vmatmul.msk.bf16.gmra.mxu0 %vm92_vm0, %v468_v15  ;;  %462 = vmatmul.msk.bf16.vlgmr.msra.gmra.mxu3 %vm92_vm0, %v470_v10 }
  0x48   :  { %452 = vmatmul.msk.bf16.gmra.mxu1 %vm92_vm0, %v468_v15 }
  0x49   :  { %460 = vmatmul.msk.bf16.gmra.mxu2 %vm92_vm0, %v468_v15 }
  0x57   :  { %445 = vmatmul.msk.bf16.gmra.mxu0 %vm92_vm0, %v469_v16  ;;  %463 = vmatmul.msk.bf16.gmra.mxu3 %vm92_vm0, %v471_v12 }
  0x58   :  { %453 = vmatmul.msk.bf16.gmra.mxu1 %vm92_vm0, %v469_v16 }
  0x59   :  { %461 = vmatmul.msk.bf16.gmra.mxu2 %vm92_vm0, %v469_v16 }
  0x84   :  { %v126_v17 = vpop.f32.mrf.mxu0 }
  0x85   :  { %v175_v18 = vpop.f32.mrf.mxu1 }
  0x8a   :  { %v156_v19 = vpop.f32.mrf.mxu3 }
  0x8c   :  { %v224_v20 = vpop.f32.mrf.mxu2  ;;  %v128_v21 = vpop.f32.mrf.mxu0 }
  0x8d   :  { %v478_v22 = vpack.c.bf16 %v128_v21, %v126_v17  ;;  %v177_v23 = vpop.f32.mrf.mxu1 }
  0x8e   :  { %v518_v24 = vpack.c.bf16 %v177_v23, %v175_v18 }
  0x8f   :  { %479 = vst [vmem:[#allocation2] sm:$0xff] %v478_v22  }
  0x90   :  { %519 = vst [vmem:[#allocation4] sm:$0xff] %v518_v24  }
  0x92   :  { %v158_v25 = vpop.f32.mrf.mxu3 }
  0x93   :  { %v508_v26 = vpack.c.bf16 %v158_v25, %v156_v19 }
  0x94   :  { %v226_v27 = vpop.f32.mrf.mxu2  ;;  %v131_v29 = vpop.f32.mrf.mxu0 }
  0x95   :  { %v558_v28 = vpack.c.bf16 %v226_v27, %v224_v20  ;;  %600 = vst [vmem:[#allocation2 + $0x30] sm:$0xff] %v508_v26   ;;  %v180_v30 = vpop.f32.mrf.mxu1 }
  0x97   :  { %609 = vst [vmem:[#allocation4 + $0x40] sm:$0xff] %v558_v28  }
  0x9a   :  { %v161_v31 = vpop.f32.mrf.mxu3 }
  0x9c   :  { %v229_v32 = vpop.f32.mrf.mxu2  ;;  %v133_v33 = vpop.f32.mrf.mxu0 }
  0x9d   :  { %v483_v34 = vpack.c.bf16 %v133_v33, %v131_v29  ;;  %v182_v35 = vpop.f32.mrf.mxu1 }
  0x9e   :  { %v523_v36 = vpack.c.bf16 %v182_v35, %v180_v30 }
  0x9f   :  { %595 = vst [vmem:[#allocation2 + $0x8] sm:$0xff] %v483_v34  }
  0xa0   :  { %602 = vst [vmem:[#allocation4 + $0x8] sm:$0xff] %v523_v36  }
  0xa2   :  { %v163_v37 = vpop.f32.mrf.mxu3 }
  0xa3   :  { %v513_v38 = vpack.c.bf16 %v163_v37, %v161_v31 }
  0xa4   :  { %v231_v39 = vpop.f32.mrf.mxu2  ;;  %v136_v41 = vpop.f32.mrf.mxu0 }
  0xa5   :  { %v563_v40 = vpack.c.bf16 %v231_v39, %v229_v32  ;;  %601 = vst [vmem:[#allocation2 + $0x38] sm:$0xff] %v513_v38   ;;  %v185_v42 = vpop.f32.mrf.mxu1 }
  0xa7   :  { %610 = vst [vmem:[#allocation4 + $0x48] sm:$0xff] %v563_v40  }
  0xaa   :  { %v205_v43 = vpop.f32.mrf.mxu3 }
  0xac   :  { %v234_v44 = vpop.f32.mrf.mxu2  ;;  %v138_v45 = vpop.f32.mrf.mxu0 }
  0xad   :  { %v488_v46 = vpack.c.bf16 %v138_v45, %v136_v41  ;;  %v187_v47 = vpop.f32.mrf.mxu1 }
  0xae   :  { %v528_v48 = vpack.c.bf16 %v187_v47, %v185_v42 }
  0xaf   :  { %596 = vst [vmem:[#allocation2 + $0x10] sm:$0xff] %v488_v46  }
  0xb0   :  { %603 = vst [vmem:[#allocation4 + $0x10] sm:$0xff] %v528_v48  }
  0xb2   :  { %v207_v49 = vpop.f32.mrf.mxu3 }
  0xb3   :  { %v548_v50 = vpack.c.bf16 %v207_v49, %v205_v43 }
  0xb4   :  { %v236_v51 = vpop.f32.mrf.mxu2  ;;  %v141_v53 = vpop.f32.mrf.mxu0 }
  0xb5   :  { %v568_v52 = vpack.c.bf16 %v236_v51, %v234_v44  ;;  %607 = vst [vmem:[#allocation4 + $0x30] sm:$0xff] %v548_v50   ;;  %v190_v54 = vpop.f32.mrf.mxu1 }
  0xb7   :  { %611 = vst [vmem:[#allocation4 + $0x50] sm:$0xff] %v568_v52  }
  0xba   :  { %v210_v55 = vpop.f32.mrf.mxu3 }
  0xbc   :  { %v239_v56 = vpop.f32.mrf.mxu2  ;;  %v143_v57 = vpop.f32.mrf.mxu0 }
  0xbd   :  { %v493_v58 = vpack.c.bf16 %v143_v57, %v141_v53  ;;  %v192_v59 = vpop.f32.mrf.mxu1 }
  0xbe   :  { %v533_v60 = vpack.c.bf16 %v192_v59, %v190_v54 }
  0xbf   :  { %597 = vst [vmem:[#allocation2 + $0x18] sm:$0xff] %v493_v58  }
  0xc0   :  { %604 = vst [vmem:[#allocation4 + $0x18] sm:$0xff] %v533_v60  }
  0xc2   :  { %v212_v61 = vpop.f32.mrf.mxu3 }
  0xc3   :  { %v553_v62 = vpack.c.bf16 %v212_v61, %v210_v55 }
  0xc4   :  { %v241_v63 = vpop.f32.mrf.mxu2  ;;  %v146_v1 = vpop.f32.mrf.mxu0 }
  0xc5   :  { %v573_v0 = vpack.c.bf16 %v241_v63, %v239_v56  ;;  %608 = vst [vmem:[#allocation4 + $0x38] sm:$0xff] %v553_v62   ;;  %v195_v2 = vpop.f32.mrf.mxu1 }
  0xc7   :  { %612 = vst [vmem:[#allocation4 + $0x58] sm:$0xff] %v573_v0  }
  0xca   :  { %v254_v3 = vpop.f32.mrf.mxu3 }
  0xcc   :  { %v244_v4 = vpop.f32.mrf.mxu2  ;;  %v148_v5 = vpop.f32.mrf.mxu0 }
  0xcd   :  { %v498_v6 = vpack.c.bf16 %v148_v5, %v146_v1  ;;  %v197_v7 = vpop.f32.mrf.mxu1 }
  0xce   :  { %v538_v8 = vpack.c.bf16 %v197_v7, %v195_v2 }
  0xcf   :  { %598 = vst [vmem:[#allocation2 + $0x20] sm:$0xff] %v498_v6  }
  0xd0   :  { %605 = vst [vmem:[#allocation4 + $0x20] sm:$0xff] %v538_v8  }
  0xd2   :  { %v256_v9 = vpop.f32.mrf.mxu3 }
  0xd3   :  { %v588_v11 = vpack.c.bf16 %v256_v9, %v254_v3 }
  0xd4   :  { %v246_v10 = vpop.f32.mrf.mxu2  ;;  %v151_v13 = vpop.f32.mrf.mxu0 }
  0xd5   :  { %v578_v12 = vpack.c.bf16 %v246_v10, %v244_v4  ;;  %615 = vst [vmem:[#allocation4 + $0x70] sm:$0xff] %v588_v11   ;;  %v200_v14 = vpop.f32.mrf.mxu1 }
  0xd7   :  { %613 = vst [vmem:[#allocation4 + $0x60] sm:$0xff] %v578_v12  }
  0xda   :  { %v259_v15 = vpop.f32.mrf.mxu3 }
  0xdc   :  { %v249_v16 = vpop.f32.mrf.mxu2  ;;  %v153_v17 = vpop.f32.mrf.mxu0 }
  0xdd   :  { %v503_v18 = vpack.c.bf16 %v153_v17, %v151_v13  ;;  %v202_v19 = vpop.f32.mrf.mxu1 }
  0xde   :  { %v543_v20 = vpack.c.bf16 %v202_v19, %v200_v14 }
  0xdf   :  { %599 = vst [vmem:[#allocation2 + $0x28] sm:$0xff] %v503_v18  }
  0xe0   :  { %606 = vst [vmem:[#allocation4 + $0x28] sm:$0xff] %v543_v20   ;;  %372 = dma.vmem_to_hbm [thread:$0]  %s365_s12, 1024, %s367_s15, [#allocation3], %s677_s16, %s677_s16, %s678_s17  }
  0xe2   :  { %v261_v21 = vpop.f32.mrf.mxu3 }
  0xe3   :  { %v593_v23 = vpack.c.bf16 %v261_v21, %v259_v15 }
  0xe4   :  { %v251_v22 = vpop.f32.mrf.mxu2 }
  0xe5   :  { %v583_v24 = vpack.c.bf16 %v251_v22, %v249_v16  ;;  %616 = vst [vmem:[#allocation4 + $0x78] sm:$0xff] %v593_v23  }
  0xe7   :  { %614 = vst [vmem:[#allocation4 + $0x68] sm:$0xff] %v583_v24  }
  0xe8   :  { %385 = dma.vmem_to_hbm [thread:$0]  %s378_s19, 2048, %s380_s22, [#allocation5], %s677_s16, %s677_s16, %s678_s17  }
  0xe9   :  { %672 = dma.done.wait [#allocation3], 1024  }
  0xea   :  { %673 = vsyncadd [#allocation3], 4294966272 }
  0xeb   :  { %674 = dma.done.wait [#allocation5], 2048  }
  0xec   :  { %675 = vsyncadd [#allocation5], 4294965248 }
  0xed   :  { %394 = vsyncpa [#allocation3], 1 }
  0xee   :  { %395 = vsyncpa [#allocation5], 1 }

</bundles_post_ra>
